<compile_context>
chip_gen: v7x
topology: tpu7x:2x2x1
jax: 0.10.0
libtpu: 0.0.40
codegen_flags: <defaults>
</compile_context>

<pallas_src>
import math

import jax
import jax.numpy as jnp
from jax.experimental import pallas as pl
from jax.experimental.pallas import tpu as pltpu

_TWO_PI = 2.0 * math.pi
_TWO_OVER_PI = 2.0 / math.pi
# Cody-Waite split of pi/2 (2x the classic cephes single-precision pi/4 split).
_P1 = 1.5703125
_P2 = 4.837512969970703125e-4
_P3 = 7.54978995489188216e-8
# cephes sinf/cosf minimax coefficients on [-pi/4, pi/4].
_S1 = -1.6666654611e-1
_S2 = 8.3321608736e-3
_S3 = -1.9515295891e-4
_C1 = 4.166664568298827e-2
_C2 = -1.388731625493765e-3
_C3 = 2.443315711809948e-5


def _round_up(n, m):
    return ((n + m - 1) // m) * m


def _sincos_shared(t):
    """sin(t), cos(t) with a single shared pi/2 range reduction.

    jnp.sin and jnp.cos each redo the reduction on the same argument; sharing it
    cuts ~30% of the vector-ALU work where this kernel saturates (v6e/v7x).
    """
    kf = jnp.round(t * _TWO_OVER_PI)                 # nearest multiple of pi/2
    # 3-term reduction; kf*_P1 and kf*_P2 are exact in f32 for |kf| < ~2^13.
    r = ((t - kf * _P1) - kf * _P2) - kf * _P3       # r in [-pi/4, pi/4]
    r2 = r * r
    sin_r = r + r * r2 * ((_S3 * r2 + _S2) * r2 + _S1)
    cos_r = ((_C3 * r2 + _C2) * r2 + _C1) * (r2 * r2) - 0.5 * r2 + 1.0
    q = kf.astype(jnp.int32)
    swap = (q & 1) != 0
    s = jnp.where(swap, cos_r, sin_r)
    c = jnp.where(swap, sin_r, cos_r)
    s = jnp.where((q & 2) != 0, -s, s)               # sin sign: q in {2,3}
    c = jnp.where(((q + 1) & 2) != 0, -c, c)         # cos sign: q in {1,2}
    return s, c


def _gfp_kernel_split(x_ref, w_ref, out_ref):
    # x_ref: (TB, 1), w_ref: (1, half) with 2*pi pre-folded, out_ref: (TB, 2*half)
    half = w_ref.shape[1]
    t = x_ref[...] * w_ref[...]                      # (TB, half)
    s, c = _sincos_shared(t)
    # half % 128 == 0 on this path -> both half-stores are unmasked lane-dense vst.
    out_ref[:, :half] = s.astype(out_ref.dtype)
    out_ref[:, half:] = c.astype(out_ref.dtype)


def _gfp_kernel_phase(x_ref, w_ref, p_ref, out_ref):
    # Phase-offset form: cos(t) = sin(t + pi/2). One full-width store at lane 0,
    # always unmasked even when half % 128 != 0.
    t = x_ref[...] * w_ref[...] + p_ref[...]         # (TB, embed_dim)
    out_ref[...] = jnp.sin(t).astype(out_ref.dtype)


def _pick_row_tile(b8, embed_dim, requested, vmem_budget_bytes=12 << 20):
    """Row tile: multiple of 8, divides b8 (no tail block -> no out[:B] copy),
    fits a double-buffered output tile in the VMEM budget, and leaves >= 2 grid
    blocks when possible so both v7x TensorCores get work."""
    bytes_per_row = 2 * (embed_dim + 1) * 4          # double-buffered out + x row
    cap = max(8, (vmem_budget_bytes // bytes_per_row) // 8 * 8)
    cap = min(cap, max(8, requested))
    if b8 >= 16:
        cap = min(cap, max(8, (b8 // 16) * 8))       # >= 2 blocks on the parallel axis
    n8 = b8 // 8
    best = 8
    d = 1
    while d * d <= n8:
        if n8 % d == 0:
            for cand in (d, n8 // d):
                if cand * 8 <= cap and cand * 8 > best:
                    best = cand * 8
        d += 1
    return best


def gaussian_fourier_projection(x, W, *, block_rows=1024):
    """x: (B,) f32 time steps, W: (embed_dim//2,) f32 fixed weights."""
    B = x.shape[0]
    half = W.shape[0]
    embed_dim = 2 * half

    x2 = x.astype(jnp.float32).reshape(B, 1)
    # W is a frozen parameter: fold 2*pi once, outside the hot path.
    w_scaled = (W.astype(jnp.float32) * _TWO_PI).reshape(1, half)

    b8 = _round_up(B, 8)
    if b8 != B:
        x2 = jnp.pad(x2, ((0, b8 - B), (0, 0)))      # padded rows sliced off below

    tb = _pick_row_tile(b8, embed_dim, block_rows)
    grid = (b8 // tb,)

    if half % 128 == 0:
        kernel = _gfp_kernel_split
        in_specs = [
            pl.BlockSpec((tb, 1), lambda i: (i, 0)),
            pl.BlockSpec((1, half), lambda i: (0, 0)),
        ]
        args = (x2, w_scaled)
    else:
        # TODO(synk): for embed_dim < 128 one could additionally fold rows into
        # lanes for fully unmasked stores; not done here (layout plumbing only).
        w_full = jnp.concatenate([w_scaled, w_scaled], axis=1)          # (1, D)
        phase = jnp.concatenate(
            [jnp.zeros((1, half), jnp.float32),
             jnp.full((1, half), 0.5 * math.pi, jnp.float32)], axis=1)  # (1, D)
        kernel = _gfp_kernel_phase
        in_specs = [
            pl.BlockSpec((tb, 1), lambda i: (i, 0)),
            pl.BlockSpec((1, embed_dim), lambda i: (0, 0)),
            pl.BlockSpec((1, embed_dim), lambda i: (0, 0)),
        ]
        args = (x2, w_full, phase)

    out_tile_bytes = tb * embed_dim * 4
    # Double-buffered out tile + temps + headroom; modest enough for v7x's 64 MiB.
    vmem_limit = int(min(64 << 20, max(24 << 20, 4 * out_tile_bytes)))

    out = pl.pallas_call(
        kernel,
        out_shape=jax.ShapeDtypeStruct((b8, embed_dim), jnp.float32),
        grid=grid,
        in_specs=in_specs,
        out_specs=pl.BlockSpec((tb, embed_dim), lambda i: (i, 0)),
        compiler_params=pltpu.CompilerParams(
            dimension_semantics=("parallel",),        # shard batch across TCs (v7x)
            vmem_limit_bytes=vmem_limit,
        ),
        cost_estimate=pl.CostEstimate(
            flops=20 * b8 * embed_dim,
            transcendentals=b8 * embed_dim,
            bytes_accessed=4 * (b8 + embed_dim + b8 * embed_dim),
        ),
    )(*args)

    return out[:B] if b8 != B else out


def _reference(x, W):
    x_proj = x[:, None] * W[None, :] * 2.0 * math.pi
    return jnp.concatenate([jnp.sin(x_proj), jnp.cos(x_proj)], axis=-1)


if __name__ == "__main__":
    key = jax.random.PRNGKey(0)
    k_w, k_x, k_w2, k_x2 = jax.random.split(key, 4)
    scale = 30.0

    # Case 1: half % 128 == 0 -> fused shared-reduction sincos + two half-stores.
    embed_dim, batch = 256, 8
    W = jax.random.normal(k_w, (embed_dim // 2,), dtype=jnp.float32) * scale
    x = jax.random.uniform(k_x, (batch,), dtype=jnp.float32)
    out = jax.block_until_ready(gaussian_fourier_projection(x, W))
    ref = _reference(x, W)
    assert out.shape == (batch, embed_dim), out.shape
    # f32 sin/cos of arguments up to ~200 (scale=30): a few-ulp argument difference
    # from the (valid) 2*pi folding order gives ~1e-5 level deltas; 1e-3 is the
    # meaningful tolerance for values in [-1, 1].
    err = float(jnp.max(jnp.abs(out - ref)))
    assert err < 1e-3, err

    # Case 2: half % 128 != 0 (and B % 8 != 0) -> phase-offset single-store path.
    embed_dim2, batch2 = 192, 6
    W2 = jax.random.normal(k_w2, (embed_dim2 // 2,), dtype=jnp.float32) * scale
    x2 = jax.random.uniform(k_x2, (batch2,), dtype=jnp.float32)
    out2 = jax.block_until_ready(gaussian_fourier_projection(x2, W2))
    ref2 = _reference(x2, W2)
    assert out2.shape == (batch2, embed_dim2), out2.shape
    err2 = float(jnp.max(jnp.abs(out2 - ref2)))
    assert err2 < 1e-3, err2

    print("KERNEL_OK")
</pallas_src>

<mosaic_0001>
module attributes {stable_mosaic.version = 11 : i64} {
  func.func @_gfp_kernel_split(%arg0: i32, %arg1: memref<8x1xf32, #tpu.memory_space<vmem>>, %arg2: memref<1x128xf32, #tpu.memory_space<vmem>>, %arg3: memref<8x256xf32, #tpu.memory_space<vmem>>) attributes {dimension_semantics = [#tpu.dimension_semantics<parallel>], iteration_bounds = array<i64: 1>, scalar_prefetch = 0 : i64, scratch_operands = 0 : i64, tpu.core_type = #tpu.core_type<tc>, window_params = [{transform_indices = @transform_0, window_bounds = array<i64: 8, 1>}, {pipeline_mode = #tpu.pipeline_mode<synchronous>, transform_indices = @transform_1, window_bounds = array<i64: 1, 128>}, {transform_indices = @transform_2, window_bounds = array<i64: 8, 256>}]} {
    %c0 = arith.constant 0 : index
    %c0_0 = arith.constant 0 : index
    %0 = vector.load %arg1[%c0, %c0_0] : memref<8x1xf32, #tpu.memory_space<vmem>>, vector<8x1xf32>
    %c0_1 = arith.constant 0 : index
    %c0_2 = arith.constant 0 : index
    %1 = vector.load %arg2[%c0_1, %c0_2] : memref<1x128xf32, #tpu.memory_space<vmem>>, vector<1x128xf32>
    %2 = vector.broadcast %0 : vector<8x1xf32> to vector<8x128xf32>
    %3 = vector.broadcast %1 : vector<1x128xf32> to vector<8x128xf32>
    %4 = arith.mulf %2, %3 : vector<8x128xf32>
    %cst = arith.constant 0.636619746 : f32
    %5 = vector.broadcast %cst : f32 to vector<8x128xf32>
    %6 = arith.mulf %4, %5 : vector<8x128xf32>
    %7 = math.roundeven %6 : vector<8x128xf32>
    %cst_3 = arith.constant 1.5703125 : f32
    %8 = vector.broadcast %cst_3 : f32 to vector<8x128xf32>
    %9 = arith.mulf %7, %8 : vector<8x128xf32>
    %10 = arith.subf %4, %9 : vector<8x128xf32>
    %cst_4 = arith.constant 4.83751297E-4 : f32
    %11 = vector.broadcast %cst_4 : f32 to vector<8x128xf32>
    %12 = arith.mulf %7, %11 : vector<8x128xf32>
    %13 = arith.subf %10, %12 : vector<8x128xf32>
    %cst_5 = arith.constant 7.549790e-08 : f32
    %14 = vector.broadcast %cst_5 : f32 to vector<8x128xf32>
    %15 = arith.mulf %7, %14 : vector<8x128xf32>
    %16 = arith.subf %13, %15 : vector<8x128xf32>
    %17 = arith.mulf %16, %16 : vector<8x128xf32>
    %18 = arith.mulf %16, %17 : vector<8x128xf32>
    %cst_6 = arith.constant -1.95152956E-4 : f32
    %19 = vector.broadcast %cst_6 : f32 to vector<8x128xf32>
    %20 = arith.mulf %19, %17 : vector<8x128xf32>
    %cst_7 = arith.constant 0.00833216123 : f32
    %21 = vector.broadcast %cst_7 : f32 to vector<8x128xf32>
    %22 = arith.addf %20, %21 : vector<8x128xf32>
    %23 = arith.mulf %22, %17 : vector<8x128xf32>
    %cst_8 = arith.constant -0.166666552 : f32
    %24 = vector.broadcast %cst_8 : f32 to vector<8x128xf32>
    %25 = arith.addf %23, %24 : vector<8x128xf32>
    %26 = arith.mulf %18, %25 : vector<8x128xf32>
    %27 = arith.addf %16, %26 : vector<8x128xf32>
    %cst_9 = arith.constant 2.44331568E-5 : f32
    %28 = vector.broadcast %cst_9 : f32 to vector<8x128xf32>
    %29 = arith.mulf %28, %17 : vector<8x128xf32>
    %cst_10 = arith.constant -0.00138873165 : f32
    %30 = vector.broadcast %cst_10 : f32 to vector<8x128xf32>
    %31 = arith.addf %29, %30 : vector<8x128xf32>
    %32 = arith.mulf %31, %17 : vector<8x128xf32>
    %cst_11 = arith.constant 0.0416666456 : f32
    %33 = vector.broadcast %cst_11 : f32 to vector<8x128xf32>
    %34 = arith.addf %32, %33 : vector<8x128xf32>
    %35 = arith.mulf %17, %17 : vector<8x128xf32>
    %36 = arith.mulf %34, %35 : vector<8x128xf32>
    %cst_12 = arith.constant 5.000000e-01 : f32
    %37 = vector.broadcast %cst_12 : f32 to vector<8x128xf32>
    %38 = arith.mulf %37, %17 : vector<8x128xf32>
    %39 = arith.subf %36, %38 : vector<8x128xf32>
    %cst_13 = arith.constant 1.000000e+00 : f32
    %40 = vector.broadcast %cst_13 : f32 to vector<8x128xf32>
    %41 = arith.addf %39, %40 : vector<8x128xf32>
    %42 = arith.fptosi %7 : vector<8x128xf32> to vector<8x128xi32>
    %c1_i32 = arith.constant 1 : i32
    %43 = vector.broadcast %c1_i32 : i32 to vector<8x128xi32>
    %44 = arith.andi %42, %43 : vector<8x128xi32>
    %c0_i32 = arith.constant 0 : i32
    %45 = vector.broadcast %c0_i32 : i32 to vector<8x128xi32>
    %46 = arith.cmpi ne, %44, %45 : vector<8x128xi32>
    %47 = arith.select %46, %41, %27 : vector<8x128xi1>, vector<8x128xf32>
    %48 = arith.select %46, %27, %41 : vector<8x128xi1>, vector<8x128xf32>
    %c2_i32 = arith.constant 2 : i32
    %49 = vector.broadcast %c2_i32 : i32 to vector<8x128xi32>
    %50 = arith.andi %42, %49 : vector<8x128xi32>
    %c0_i32_14 = arith.constant 0 : i32
    %51 = vector.broadcast %c0_i32_14 : i32 to vector<8x128xi32>
    %52 = arith.cmpi ne, %50, %51 : vector<8x128xi32>
    %cst_15 = arith.constant 0.000000e+00 : f32
    %53 = vector.broadcast %cst_15 : f32 to vector<8x128xf32>
    %54 = arith.subf %53, %47 : vector<8x128xf32>
    %55 = arith.select %52, %54, %47 : vector<8x128xi1>, vector<8x128xf32>
    %c1_i32_16 = arith.constant 1 : i32
    %56 = vector.broadcast %c1_i32_16 : i32 to vector<8x128xi32>
    %57 = arith.addi %42, %56 : vector<8x128xi32>
    %c2_i32_17 = arith.constant 2 : i32
    %58 = vector.broadcast %c2_i32_17 : i32 to vector<8x128xi32>
    %59 = arith.andi %57, %58 : vector<8x128xi32>
    %c0_i32_18 = arith.constant 0 : i32
    %60 = vector.broadcast %c0_i32_18 : i32 to vector<8x128xi32>
    %61 = arith.cmpi ne, %59, %60 : vector<8x128xi32>
    %cst_19 = arith.constant 0.000000e+00 : f32
    %62 = vector.broadcast %cst_19 : f32 to vector<8x128xf32>
    %63 = arith.subf %62, %48 : vector<8x128xf32>
    %64 = arith.select %61, %63, %48 : vector<8x128xi1>, vector<8x128xf32>
    %c0_20 = arith.constant 0 : index
    %c0_21 = arith.constant 0 : index
    %65 = vector.load %arg3[%c0_20, %c0_21] : memref<8x256xf32, #tpu.memory_space<vmem>>, vector<8x128xf32>
    tpu.vector_store %arg3[%c0_20, %c0_21], %55 {strides = array<i32>} : memref<8x256xf32, #tpu.memory_space<vmem>>, vector<8x128xf32>,
    %c0_22 = arith.constant 0 : index
    %c128 = arith.constant 128 : index
    %66 = vector.load %arg3[%c0_22, %c128] : memref<8x256xf32, #tpu.memory_space<vmem>>, vector<8x128xf32>
    tpu.vector_store %arg3[%c0_22, %c128], %64 {strides = array<i32>} : memref<8x256xf32, #tpu.memory_space<vmem>>, vector<8x128xf32>,
    return
  }
  func.func @transform_0(%arg0: i32) -> (i32, i32) {
    %c0_i32 = arith.constant 0 : i32
    %c0_i32_0 = arith.constant 0 : i32
    return %arg0, %c0_i32 : i32, i32
  }
  func.func @transform_1(%arg0: i32) -> (i32, i32) {
    %c0_i32 = arith.constant 0 : i32
    %c0_i32_0 = arith.constant 0 : i32
    %c0_i32_1 = arith.constant 0 : i32
    return %c0_i32, %c0_i32_0 : i32, i32
  }
  func.func @transform_2(%arg0: i32) -> (i32, i32) {
    %c0_i32 = arith.constant 0 : i32
    %c0_i32_0 = arith.constant 0 : i32
    return %arg0, %c0_i32 : i32, i32
  }
}

</mosaic_0001>

<bundles_post_ra>
// kernel: tpu_custom_call.1
= control target key start
LH: loop header
LB: loop body
LE: loop exit
PB: predicated region body
PF: predicated region fallthrough
CT: control target
= control target key end

     0   :  { %s148_s0 = inlined_call_operand.vmem [shape: f32[8,1], index: 0, kind: input, shape index: {}]   ;;  %s149_s1 = inlined_call_operand.vmem [shape: f32[1,128], index: 1, kind: input, shape index: {}]   ;;  %s150_s2 = inlined_call_operand.hbm [shape: f32[8,256], index: 2, kind: output, shape index: {}]  }
   0x1   :  { %v12_v0 = vld [vmem:[%s148_s0] sm:$0xff] }
   0x2   :  { %7 = vsyncpa [#allocation3], 0  ;;  %v113_v1 = vmov 0   ;;  %v81_v2 = vld [vmem:[%s149_s1] ss:$0 sm:$0xff]  ;;  %s114_s0 = smov [#allocation2]  }
   0x3   :  { %88 = vset.pattern.permute.xlu0 %v113_v1  ;;  %s73_s1 = sshll.u32 %s114_s0, 4  ;;  %s74_s1 = int_to_ptr.vmem [resolvable:$true] %s73_s1 }
   0x4   :  { %16 = vperm.xlu0 %88, %v12_v0   ;;  %s89_s13 = scalar_lea.vmem %s74_s1, 256  ;;  %p94_p1 = scmp.lt.s32.totalorder %s74_s1, %s74_s1 }
   0x5   :  { %p90_p0 = scmp.ne.s32.totalorder %s74_s1, %s89_s13  ;;  %p95_p2 = scmp.lt.s32.totalorder %s89_s13, %s89_s13 }
   0x7   :  { %p96_p3 = por %p95_p2, %p94_p1 }
   0x9   :  { %p97_p4 = pnand %p96_p3, %p90_p0 }
  0x83   :  { %v17_v3 = vpop.permute.xlu0 %16 }
  0x84   :  { %v25_v4 = vmul.f32 %v81_v2, %v17_v3 }
  0x86   :  { %v26_v5 = vmul.f32 0.63661975, %v25_v4 }
  0x88   :  { %v82_v6 = vround.rtne.f32 %v26_v5  ;;  %v85_v18 = vcvt.f32.s32 %v26_v5 }
  0x8a   :  { %v28_v7 = vmul.f32 1.5703125, %v82_v6  ;;  %v30_v9 = vmul.f32 0.0004837513, %v82_v6  ;;  %v32_v11 = vmul.f32 7.54979e-08, %v82_v6  ;;  %v60_v28 = vadd.s32 1, %v85_v18 }
  0x8b   :  { %v52_v29 = vand.u32 1, %v85_v18  ;;  %v56_v33 = vand.u32 2, %v85_v18 }
  0x8c   :  { %v29_v8 = vsub.f32 %v25_v4, %v28_v7  ;;  %v61_v34 = vand.u32 2, %v60_v28 }
  0x8d   :  { %vm53_vm0 = vcmp.ne.s32.totalorder %v52_v29, 0  ;;  %vm57_vm1 = vcmp.ne.s32.totalorder %v56_v33, 0 }
  0x8e   :  { %v31_v10 = vsub.f32 %v29_v8, %v30_v9  ;;  %vm62_vm2 = vcmp.ne.s32.totalorder %v61_v34, 0 }
  0x90   :  { %v33_v12 = vsub.f32 %v31_v10, %v32_v11 }
  0x92   :  { %v34_v13 = vmul.f32 %v33_v12, %v33_v12 }
  0x94   :  { %v36_v14 = vmul.f32 -0.00019515296, %v34_v13  ;;  %v42_v15 = vmul.f32 2.4433157e-05, %v34_v13  ;;  %v35_v21 = vmul.f32 %v34_v13, %v33_v12  ;;  %v46_v24 = vmul.f32 %v34_v13, %v34_v13 }
  0x95   :  { %v48_v27 = vmul.f32 0.5, %v34_v13 }
  0x96   :  { %v37_v16 = vadd.f32 0.008332161, %v36_v14  ;;  %v43_v17 = vadd.f32 -0.0013887316, %v42_v15 }
  0x98   :  { %v38_v19 = vmul.f32 %v37_v16, %v34_v13  ;;  %v44_v20 = vmul.f32 %v43_v17, %v34_v13 }
  0x9a   :  { %v39_v22 = vadd.f32 -0.16666655, %v38_v19  ;;  %v45_v23 = vadd.f32 0.041666646, %v44_v20 }
  0x9c   :  { %v40_v25 = vmul.f32 %v39_v22, %v35_v21  ;;  %v47_v26 = vmul.f32 %v46_v24, %v45_v23 }
  0x9e   :  { %v49_v30 = vsub.f32 %v47_v26, %v48_v27  ;;  %v41_v31 = vadd.f32 %v40_v25, %v33_v12 }
  0xa0   :  { %v50_v32 = vadd.f32 1.0, %v49_v30 }
  0xa2   :  { %v54_v35 = vsel %vm53_vm0, %v50_v32, %v41_v31  ;;  %v55_v36 = vsel %vm53_vm0, %v41_v31, %v50_v32 }
  0xa3   :  { %v58_v37 = vsub.f32 0.0, %v54_v35  ;;  %v63_v38 = vsub.f32 0.0, %v55_v36 }
  0xa5   :  { %v59_v39 = vsel %vm57_vm1, %v58_v37, %v54_v35  ;;  %v64_v40 = vsel %vm62_vm2, %v63_v38, %v55_v36 }
  0xa6   :  { %65 = vst [vmem:[#allocation2] sm:$0xff] %v59_v39  ;;  %66 = vst [vmem:[#allocation2 + $0x8] sm:$0xff] %v64_v40 }
  0xa7   :  { %100 = shalt.err (!%p97_p4)
}
  0xa8   :  { %s101_s16 = scalar_lea.hbm %s150_s2, 256 }
  0xa9   :  { %p102_p5 = scmp.ne.s32.totalorder %s150_s2, %s101_s16  ;;  %p105_p6 = scmp.lt.u32.totalorder %s101_s16, %s150_s2 }
  0xab   :  { %p107_p7 = pnand %p105_p6, %p102_p5 }
  0xad   :  { %110 = shalt.err (!%p107_p7)
}
  0xae   :  { %76 = dma.vmem_to_hbm [thread:$0]  %s74_s1, 256, %s150_s2, [#allocation3]  }
  0xaf   :  { %111 = dma.done.wait [#allocation3], 256  }
  0xb0   :  { %112 = vsyncadd [#allocation3], 4294967040 }
  0xb1   :  { %80 = vsyncpa [#allocation3], 1 }

</bundles_post_ra>
